<compile_context>
chip_gen: v7x
topology: tpu7x:2x2x1
jax: 0.10.0
libtpu: 0.0.40
codegen_flags: <defaults>
</compile_context>

<pallas_src>
import functools

import jax
import jax.numpy as jnp
from jax.experimental import pallas as pl
from jax.experimental.pallas import tpu as pltpu


def _round_up(x, m):
    return (x + m - 1) // m * m


def _vmem_cap_bytes():
    try:
        return int(pltpu.get_tpu_info().vmem_capacity_bytes)
    except Exception:
        return 64 * 1024 * 1024  # v7x-safe fallback


def _pick_tile_b(B):
    """Batch tile = MXU M dim. Fill it (128 on v5e, 256 on v6e/v7x) while
    keeping >= 2 grid steps on the parallel axis so megacore can shard it."""
    bp = _round_up(B, 8)
    if bp >= 512:
        return 256
    if bp >= 256:
        return 128
    return bp  # small batch: one tile; grid-step overhead would dominate


def _pick_tile_v(V):
    """Vocab tile = lane dim of the counts / MXU K dim: multiple of 128,
    capped so two double-buffered emb tiles stay well inside v7x's 64 MiB."""
    return min(_round_up(V, 128), 1024)


def _pick_s_chunk(s_pad, tile_b, tile_v, budget_bytes=2 * 1024 * 1024):
    """Sequence chunk so the live (tile_b, s_chunk, tile_v) f32 one-hot slab
    stays under ~budget_bytes. Returns a multiple of 8 dividing s_pad."""
    c = budget_bytes // (tile_b * tile_v * 4)
    c = max(8, (c // 8) * 8)
    c = min(c, s_pad)
    while s_pad % c != 0:
        c -= 8
    return max(c, 8)


def dan_kernel(ids_ref, len_ref, emb_ref, w1_ref, b1_ref, w2_ref, b2_ref,
               out_ref, acc_ref, *, counts_dtype):
    """One (batch-tile i, vocab-tile j) grid step.

    Every j: histogram this batch tile's token ids against vocab tile j and
    accumulate counts_tile @ emb_tile into the f32 pooled-sum scratch
    (fused embedding lookup + sum pooling; K = tile_v on the MXU).
    Last j: divide by lengths and run the two Linear+ReLU layers on the MXU.
    """
    j = pl.program_id(1)
    tile_v = emb_ref.shape[0]
    n_chunks, tile_b, s_chunk = ids_ref.shape  # chunk-major token ids

    @pl.when(j == 0)
    def _():
        acc_ref[...] = jnp.zeros_like(acc_ref)

    # Token-count histogram restricted to this vocab tile.  The iota is a tiny
    # (1, 1, tile_v) lane vector, the vocab-tile offset is subtracted from the
    # 2-D ids, and the sequence axis is consumed chunk by chunk via fori_loop
    # so only one (tile_b, s_chunk, tile_v) f32 slab is ever live.
    # NOTE: out-of-range ids (>= V or < 0) contribute nothing here (a gather
    # would clamp); padded tokens carry id -1 and therefore never match.
    vocab_iota = jax.lax.broadcasted_iota(jnp.int32, (1, 1, tile_v), 2)

    def chunk_counts(chunk_ids):                                   # (TB, SC) i32
        one_hot = (chunk_ids[:, :, None] == vocab_iota).astype(jnp.float32)
        return jnp.sum(one_hot, axis=1)                            # (TB, tile_v)

    if n_chunks == 1:
        counts = chunk_counts(ids_ref[0] - j * tile_v)
    else:
        def body(c, acc):
            return acc + chunk_counts(ids_ref[c] - j * tile_v)
        counts = jax.lax.fori_loop(
            0, n_chunks, body, jnp.zeros((tile_b, tile_v), jnp.float32))

    # counts are exact small integers (<= S); cast to bf16 (exact while
    # S <= 256) so the MXU runs at full bf16 rate with an f32 accumulator.
    acc_ref[...] += jnp.dot(counts.astype(counts_dtype), emb_ref[...],
                            preferred_element_type=jnp.float32)

    @pl.when(j == pl.num_programs(1) - 1)
    def _():
        # Exact divide: runs once per batch tile, negligible cost.
        pooled = (acc_ref[...] / len_ref[...]).astype(jnp.bfloat16)   # (TB, EP)
        h = jnp.dot(pooled, w1_ref[...],
                    preferred_element_type=jnp.float32) + b1_ref[...]
        h = jnp.maximum(h, 0.0).astype(jnp.bfloat16)
        o = jnp.dot(h, w2_ref[...],
                    preferred_element_type=jnp.float32) + b2_ref[...]
        out_ref[...] = jnp.maximum(o, 0.0).astype(out_ref.dtype)


def prepare_dan_params(emb, w1, b1, w2, b2, *, tile_v=None):
    """One-time parameter prep, hoisted out of the per-call wrapper:
    bf16 casts plus zero-padding of V to a tile_v multiple and of E/H to lane
    (128) multiples.  Zero pad rows/cols are exact no-ops through the
    histogram matmul, the Linear layers, and ReLU."""
    V, E = emb.shape
    E2, H = w1.shape
    assert E2 == E and w2.shape == (H, H) and b1.shape == (H,) and b2.shape == (H,)
    if tile_v is None:
        tile_v = _pick_tile_v(V)
    assert tile_v % 128 == 0, "vocab tile must be a multiple of 128 lanes"
    VP = _round_up(V, tile_v)
    EP = _round_up(E, 128)
    HP = _round_up(H, 128)
    emb_p = jnp.zeros((VP, EP), jnp.bfloat16).at[:V, :E].set(emb.astype(jnp.bfloat16))
    w1_p = jnp.zeros((EP, HP), jnp.bfloat16).at[:E, :H].set(w1.astype(jnp.bfloat16))
    b1_p = jnp.zeros((1, HP), jnp.float32).at[:, :H].set(b1.astype(jnp.float32))
    w2_p = jnp.zeros((HP, HP), jnp.bfloat16).at[:H, :H].set(w2.astype(jnp.bfloat16))
    b2_p = jnp.zeros((1, HP), jnp.float32).at[:, :H].set(b2.astype(jnp.float32))
    return dict(emb=emb_p, w1=w1_p, b1=b1_p, w2=w2_p, b2=b2_p,
                V=V, E=E, H=H, VP=VP, EP=EP, HP=HP, tile_v=tile_v)


def dan_feature_extractor(ids, lengths, params, *, tile_b=None, s_chunk=None):
    """ids: (B, S) int token ids, lengths: (B,) float; params from
    prepare_dan_params().  Returns (B, H) float32 features."""
    B, S = ids.shape
    VP, EP = params["emb"].shape
    HP = params["w1"].shape[1]
    H = params["H"]
    tile_v = params["tile_v"]

    if tile_b is None:
        tile_b = _pick_tile_b(B)
    assert tile_b % 8 == 0, "batch tile must be a multiple of 8 sublanes"
    BP = _round_up(B, tile_b)

    if s_chunk is None:
        S_pad = _round_up(S, 8)
        s_chunk = _pick_s_chunk(S_pad, tile_b, tile_v)
    else:
        assert s_chunk % 8 == 0, "s_chunk must be a multiple of 8"
        S_pad = _round_up(S, s_chunk)
    n_chunks = S_pad // s_chunk

    # counts fit exactly in bf16 while the per-tile token count (<= S) <= 256;
    # otherwise keep them in f32 (half-rate MXU, still exact).
    counts_dtype = jnp.bfloat16 if S <= 256 else jnp.float32

    # Pad activations: extra tokens get id -1 (never match any vocab tile),
    # extra batch rows get length 1 (avoid div-by-zero; sliced off below).
    ids_p = jnp.full((BP, S_pad), -1, jnp.int32).at[:B, :S].set(ids.astype(jnp.int32))
    # Chunk-major layout (n_chunks, BP, s_chunk): the in-kernel loop indexes the
    # leading axis dynamically, which keeps the one-hot slab bounded.
    ids_c = ids_p.reshape(BP, n_chunks, s_chunk).transpose(1, 0, 2)
    len_p = jnp.ones((BP, 1), jnp.float32).at[:B, 0].set(lengths.astype(jnp.float32))

    grid = (BP // tile_b, VP // tile_v)

    # VMEM budget: double-buffered pipeline blocks + accumulator + one live
    # one-hot slab, clamped to 80% of this generation's physical VMEM.
    vmem_est = (
        2 * n_chunks * tile_b * s_chunk * 4        # ids tile
        + 2 * tile_b * 4                           # lengths tile
        + 2 * tile_v * EP * 2                      # emb vocab tile (bf16)
        + 2 * (EP * HP + HP * HP) * 2              # W1/W2 (bf16)
        + 2 * 2 * HP * 4                           # b1/b2
        + 2 * tile_b * HP * 4                      # output tile
        + tile_b * EP * 4                          # pooled-sum accumulator
        + 2 * tile_b * s_chunk * tile_v * 4)       # one-hot working set
    vmem_limit = int(min(max(2 * vmem_est, 32 * 1024 * 1024),
                         0.8 * _vmem_cap_bytes()))

    kernel = functools.partial(dan_kernel, counts_dtype=counts_dtype)

    out_padded = pl.pallas_call(
        kernel,
        out_shape=jax.ShapeDtypeStruct((BP, HP), jnp.float32),
        grid_spec=pltpu.PrefetchScalarGridSpec(
            num_scalar_prefetch=0,
            grid=grid,
            in_specs=[
                pl.BlockSpec((n_chunks, tile_b, s_chunk), lambda i, j: (0, i, 0)),
                pl.BlockSpec((tile_b, 1), lambda i, j: (i, 0)),      # lengths
                pl.BlockSpec((tile_v, EP), lambda i, j: (j, 0)),     # emb vocab tile
                pl.BlockSpec((EP, HP), lambda i, j: (0, 0)),         # W1 (bf16)
                pl.BlockSpec((1, HP), lambda i, j: (0, 0)),          # b1
                pl.BlockSpec((HP, HP), lambda i, j: (0, 0)),         # W2 (bf16)
                pl.BlockSpec((1, HP), lambda i, j: (0, 0)),          # b2
            ],
            out_specs=pl.BlockSpec((tile_b, HP), lambda i, j: (i, 0)),
            scratch_shapes=[pltpu.VMEM((tile_b, EP), jnp.float32)],  # pooled sum
        ),
        compiler_params=pltpu.CompilerParams(
            dimension_semantics=("parallel", "arbitrary"),
            vmem_limit_bytes=vmem_limit,
        ),
    )(ids_c, len_p, params["emb"], params["w1"], params["b1"],
      params["w2"], params["b2"])

    return out_padded[:B, :H]


def _reference(ids, lengths, emb, w1, b1, w2, b2):
    embeds = jnp.take(emb, ids, axis=0)                  # (B, S, E)
    pooled = embeds.sum(axis=1) / lengths[:, None]
    h = jnp.maximum(pooled @ w1 + b1, 0.0)
    return jnp.maximum(h @ w2 + b2, 0.0)


if __name__ == "__main__":
    # Small shapes consistent with the module: vocab=300, emb_size=48,
    # num_layers=2, hidden_size=40, batch=20, seq=10.  V/E/H/B/S are all
    # non-multiples of the tile sizes so the padding paths are exercised, and
    # tile_v/tile_b/s_chunk are chosen so the vocab reduction (3 steps), the
    # batch tiling (2 steps) and the S-chunk loop (2 chunks) all run.
    V, E, H = 300, 48, 40
    B, S = 20, 10

    key = jax.random.PRNGKey(0)
    k_ids, k_len, k_emb, k_w1, k_b1, k_w2, k_b2 = jax.random.split(key, 7)

    lengths = jax.random.randint(k_len, (B,), minval=3, maxval=S + 1).astype(jnp.float32)
    ids = jax.random.randint(k_ids, (B, S), minval=1, maxval=V, dtype=jnp.int32)
    pos = jnp.arange(S)[None, :]
    ids = jnp.where(pos < lengths[:, None].astype(jnp.int32), ids, 0)  # pad idx 0

    emb = jax.random.normal(k_emb, (V, E), dtype=jnp.float32) * 0.1
    emb = emb.at[0].set(0.0)                              # padding_idx = 0
    w1 = jax.random.normal(k_w1, (E, H), dtype=jnp.float32) * 0.1
    b1 = jax.random.normal(k_b1, (H,), dtype=jnp.float32) * 0.1
    w2 = jax.random.normal(k_w2, (H, H), dtype=jnp.float32) * 0.1
    b2 = jax.random.normal(k_b2, (H,), dtype=jnp.float32) * 0.1

    # Parameter prep (bf16 cast + padding) happens once, outside the call path.
    params = prepare_dan_params(emb, w1, b1, w2, b2, tile_v=128)  # VP=384: 3 vocab steps
    out = dan_feature_extractor(ids, lengths, params, tile_b=16, s_chunk=8)
    out = jax.block_until_ready(out)

    ref = _reference(ids, lengths, emb, w1, b1, w2, b2)
    assert out.shape == (B, H)
    # bf16 MXU operands => loosened tolerance vs the f32 reference.
    assert jnp.allclose(out, ref, atol=1e-2, rtol=1e-2), "mismatch vs JAX reference"

    print("KERNEL_OK")
</pallas_src>

<mosaic_0001>
module attributes {stable_mosaic.version = 11 : i64} {
  func.func @dan_kernel(%arg0: i32, %arg1: i32, %arg2: memref<2x16x8xi32, #tpu.memory_space<vmem>>, %arg3: memref<16x1xf32, #tpu.memory_space<vmem>>, %arg4: memref<128x128xbf16, #tpu.memory_space<vmem>>, %arg5: memref<128x128xbf16, #tpu.memory_space<vmem>>, %arg6: memref<1x128xf32, #tpu.memory_space<vmem>>, %arg7: memref<128x128xbf16, #tpu.memory_space<vmem>>, %arg8: memref<1x128xf32, #tpu.memory_space<vmem>>, %arg9: memref<16x128xf32, #tpu.memory_space<vmem>>, %arg10: memref<16x128xf32, #tpu.memory_space<vmem>>) attributes {dimension_semantics = [#tpu.dimension_semantics<parallel>, #tpu.dimension_semantics<arbitrary>], iteration_bounds = array<i64: 2, 3>, scalar_prefetch = 0 : i64, scratch_operands = 1 : i64, tpu.core_type = #tpu.core_type<tc>, window_params = [{transform_indices = @transform_0, window_bounds = array<i64: 2, 16, 8>}, {transform_indices = @transform_1, window_bounds = array<i64: 16, 1>}, {transform_indices = @transform_2, window_bounds = array<i64: 128, 128>}, {pipeline_mode = #tpu.pipeline_mode<synchronous>, transform_indices = @transform_3, window_bounds = array<i64: 128, 128>}, {pipeline_mode = #tpu.pipeline_mode<synchronous>, transform_indices = @transform_4, window_bounds = array<i64: 1, 128>}, {pipeline_mode = #tpu.pipeline_mode<synchronous>, transform_indices = @transform_5, window_bounds = array<i64: 128, 128>}, {pipeline_mode = #tpu.pipeline_mode<synchronous>, transform_indices = @transform_6, window_bounds = array<i64: 1, 128>}, {transform_indices = @transform_7, window_bounds = array<i64: 16, 128>}]} {
    %c0_i32 = arith.constant 0 : i32
    %0 = arith.cmpi eq, %arg1, %c0_i32 : i32
    %1 = arith.extui %0 : i1 to i32
    %c0_i32_0 = arith.constant 0 : i32
    %2 = arith.cmpi ne, %1, %c0_i32_0 : i32
    scf.if %2 {
      %cst_11 = arith.constant 0.000000e+00 : f32
      %16 = vector.broadcast %cst_11 : f32 to vector<16x128xf32>
      %c0_12 = arith.constant 0 : index
      %c0_13 = arith.constant 0 : index
      %17 = vector.load %arg10[%c0_12, %c0_13] : memref<16x128xf32, #tpu.memory_space<vmem>>, vector<16x128xf32>
      tpu.vector_store %arg10[%c0_12, %c0_13], %16 {strides = array<i32>} : memref<16x128xf32, #tpu.memory_space<vmem>>, vector<16x128xf32>,
    } else {
    }
    %3 = tpu.iota {dimensions = array<i32: 2>} : vector<1x1x128xi32>
    %cst = arith.constant 0.000000e+00 : f32
    %4 = vector.broadcast %cst : f32 to vector<16x128xf32>
    %c0_i32_1 = arith.constant 0 : i32
    %c2_i32 = arith.constant 2 : i32
    %5 = arith.addi %c0_i32_1, %c2_i32 : i32
    %c1_i32 = arith.constant 1 : i32
    %6 = scf.for %arg11 = %c0_i32_1 to %5 step %c1_i32 iter_args(%arg12 = %4) -> (vector<16x128xf32>)  : i32 {
      %16 = arith.index_cast %arg11 : i32 to index
      %c0_11 = arith.constant 0 : index
      %c0_12 = arith.constant 0 : index
      %17 = vector.load %arg2[%16, %c0_11, %c0_12] : memref<2x16x8xi32, #tpu.memory_space<vmem>>, vector<1x16x8xi32>
      %18 = vector.shape_cast %17 : vector<1x16x8xi32> to vector<16x8xi32>
      %c128_i32 = arith.constant 128 : i32
      %19 = arith.muli %arg1, %c128_i32 : i32
      %20 = vector.broadcast %19 : i32 to vector<16x8xi32>
      %21 = arith.subi %18, %20 : vector<16x8xi32>
      %22 = vector.shape_cast %21 : vector<16x8xi32> to vector<16x8x1xi32>
      %23 = vector.broadcast %22 : vector<16x8x1xi32> to vector<16x8x128xi32>
      %24 = vector.broadcast %3 : vector<1x1x128xi32> to vector<16x8x128xi32>
      %25 = arith.cmpi eq, %23, %24 : vector<16x8x128xi32>
      %26 = arith.extui %25 : vector<16x8x128xi1> to vector<16x8x128xi32>
      %27 = arith.sitofp %26 : vector<16x8x128xi32> to vector<16x8x128xf32>
      %cst_13 = arith.constant dense<0.000000e+00> : vector<16x128xf32>
      %28 = vector.multi_reduction <add>, %27, %cst_13 [1] : vector<16x8x128xf32> to vector<16x128xf32>
      %29 = arith.addf %arg12, %28 : vector<16x128xf32>
      scf.yield %29 : vector<16x128xf32>
    }
    %c2_i32_2 = arith.constant 2 : i32
    %c0 = arith.constant 0 : index
    %c0_3 = arith.constant 0 : index
    %7 = vector.load %arg10[%c0, %c0_3] : memref<16x128xf32, #tpu.memory_space<vmem>>, vector<16x128xf32>
    %8 = arith.truncf %6 : vector<16x128xf32> to vector<16x128xbf16>
    %c0_4 = arith.constant 0 : index
    %c0_5 = arith.constant 0 : index
    %9 = vector.load %arg4[%c0_4, %c0_5] : memref<128x128xbf16, #tpu.memory_space<vmem>>, vector<128x128xbf16>
    %cst_6 = arith.constant dense<0.000000e+00> : vector<16x128xf32>
    %10 = tpu.matmul %8, %9, %cst_6 {dimension_numbers = #tpu.dot_dimension_numbers<[1], [0], [0], [1], [0, 0, 1, 1], [], []>} : vector<16x128xbf16>, vector<128x128xbf16>, vector<16x128xf32> -> vector<16x128xf32>
    %11 = arith.addf %7, %10 : vector<16x128xf32>
    %c0_7 = arith.constant 0 : index
    %c0_8 = arith.constant 0 : index
    %12 = vector.load %arg10[%c0_7, %c0_8] : memref<16x128xf32, #tpu.memory_space<vmem>>, vector<16x128xf32>
    tpu.vector_store %arg10[%c0_7, %c0_8], %11 {strides = array<i32>} : memref<16x128xf32, #tpu.memory_space<vmem>>, vector<16x128xf32>,
    %c2_i32_9 = arith.constant 2 : i32
    %13 = arith.cmpi eq, %arg1, %c2_i32_9 : i32
    %14 = arith.extui %13 : i1 to i32
    %c0_i32_10 = arith.constant 0 : i32
    %15 = arith.cmpi ne, %14, %c0_i32_10 : i32
    scf.if %15 {
      %c0_11 = arith.constant 0 : index
      %c0_12 = arith.constant 0 : index
      %16 = vector.load %arg10[%c0_11, %c0_12] : memref<16x128xf32, #tpu.memory_space<vmem>>, vector<16x128xf32>
      %c0_13 = arith.constant 0 : index
      %c0_14 = arith.constant 0 : index
      %17 = vector.load %arg3[%c0_13, %c0_14] : memref<16x1xf32, #tpu.memory_space<vmem>>, vector<16x1xf32>
      %18 = vector.broadcast %17 : vector<16x1xf32> to vector<16x128xf32>
      %19 = arith.divf %16, %18 : vector<16x128xf32>
      %20 = arith.truncf %19 : vector<16x128xf32> to vector<16x128xbf16>
      %c0_15 = arith.constant 0 : index
      %c0_16 = arith.constant 0 : index
      %21 = vector.load %arg5[%c0_15, %c0_16] : memref<128x128xbf16, #tpu.memory_space<vmem>>, vector<128x128xbf16>
      %cst_17 = arith.constant dense<0.000000e+00> : vector<16x128xf32>
      %22 = tpu.matmul %20, %21, %cst_17 {dimension_numbers = #tpu.dot_dimension_numbers<[1], [0], [0], [1], [0, 0, 1, 1], [], []>} : vector<16x128xbf16>, vector<128x128xbf16>, vector<16x128xf32> -> vector<16x128xf32>
      %c0_18 = arith.constant 0 : index
      %c0_19 = arith.constant 0 : index
      %23 = vector.load %arg6[%c0_18, %c0_19] : memref<1x128xf32, #tpu.memory_space<vmem>>, vector<1x128xf32>
      %24 = vector.broadcast %23 : vector<1x128xf32> to vector<16x128xf32>
      %25 = arith.addf %22, %24 : vector<16x128xf32>
      %cst_20 = arith.constant 0.000000e+00 : f32
      %26 = vector.broadcast %cst_20 : f32 to vector<16x128xf32>
      %27 = arith.maximumf %25, %26 : vector<16x128xf32>
      %28 = arith.truncf %27 : vector<16x128xf32> to vector<16x128xbf16>
      %c0_21 = arith.constant 0 : index
      %c0_22 = arith.constant 0 : index
      %29 = vector.load %arg7[%c0_21, %c0_22] : memref<128x128xbf16, #tpu.memory_space<vmem>>, vector<128x128xbf16>
      %cst_23 = arith.constant dense<0.000000e+00> : vector<16x128xf32>
      %30 = tpu.matmul %28, %29, %cst_23 {dimension_numbers = #tpu.dot_dimension_numbers<[1], [0], [0], [1], [0, 0, 1, 1], [], []>} : vector<16x128xbf16>, vector<128x128xbf16>, vector<16x128xf32> -> vector<16x128xf32>
      %c0_24 = arith.constant 0 : index
      %c0_25 = arith.constant 0 : index
      %31 = vector.load %arg8[%c0_24, %c0_25] : memref<1x128xf32, #tpu.memory_space<vmem>>, vector<1x128xf32>
      %32 = vector.broadcast %31 : vector<1x128xf32> to vector<16x128xf32>
      %33 = arith.addf %30, %32 : vector<16x128xf32>
      %cst_26 = arith.constant 0.000000e+00 : f32
      %34 = vector.broadcast %cst_26 : f32 to vector<16x128xf32>
      %35 = arith.maximumf %33, %34 : vector<16x128xf32>
      %c0_27 = arith.constant 0 : index
      %c0_28 = arith.constant 0 : index
      %36 = vector.load %arg9[%c0_27, %c0_28] : memref<16x128xf32, #tpu.memory_space<vmem>>, vector<16x128xf32>
      tpu.vector_store %arg9[%c0_27, %c0_28], %35 {strides = array<i32>} : memref<16x128xf32, #tpu.memory_space<vmem>>, vector<16x128xf32>,
    } else {
    }
    return
  }
  func.func @transform_0(%arg0: i32, %arg1: i32) -> (i32, i32, i32) {
    %c0_i32 = arith.constant 0 : i32
    %c0_i32_0 = arith.constant 0 : i32
    %c0_i32_1 = arith.constant 0 : i32
    return %c0_i32, %arg0, %c0_i32_0 : i32, i32, i32
  }
  func.func @transform_1(%arg0: i32, %arg1: i32) -> (i32, i32) {
    %c0_i32 = arith.constant 0 : i32
    %c0_i32_0 = arith.constant 0 : i32
    return %arg0, %c0_i32 : i32, i32
  }
  func.func @transform_2(%arg0: i32, %arg1: i32) -> (i32, i32) {
    %c0_i32 = arith.constant 0 : i32
    %c0_i32_0 = arith.constant 0 : i32
    return %arg1, %c0_i32 : i32, i32
  }
  func.func @transform_3(%arg0: i32, %arg1: i32) -> (i32, i32) {
    %c0_i32 = arith.constant 0 : i32
    %c0_i32_0 = arith.constant 0 : i32
    %c0_i32_1 = arith.constant 0 : i32
    return %c0_i32, %c0_i32_0 : i32, i32
  }
  func.func @transform_4(%arg0: i32, %arg1: i32) -> (i32, i32) {
    %c0_i32 = arith.constant 0 : i32
    %c0_i32_0 = arith.constant 0 : i32
    %c0_i32_1 = arith.constant 0 : i32
    return %c0_i32, %c0_i32_0 : i32, i32
  }
  func.func @transform_5(%arg0: i32, %arg1: i32) -> (i32, i32) {
    %c0_i32 = arith.constant 0 : i32
    %c0_i32_0 = arith.constant 0 : i32
    %c0_i32_1 = arith.constant 0 : i32
    return %c0_i32, %c0_i32_0 : i32, i32
  }
  func.func @transform_6(%arg0: i32, %arg1: i32) -> (i32, i32) {
    %c0_i32 = arith.constant 0 : i32
    %c0_i32_0 = arith.constant 0 : i32
    %c0_i32_1 = arith.constant 0 : i32
    return %c0_i32, %c0_i32_0 : i32, i32
  }
  func.func @transform_7(%arg0: i32, %arg1: i32) -> (i32, i32) {
    %c0_i32 = arith.constant 0 : i32
    %c0_i32_0 = arith.constant 0 : i32
    return %arg0, %c0_i32 : i32, i32
  }
}

</mosaic_0001>

<bundles_post_ra>
// kernel: tpu_custom_call.1
= control target key start
LH: loop header
LB: loop body
LE: loop exit
PB: predicated region body
PF: predicated region fallthrough
CT: control target
= control target key end

     0   :  { %s2805_s0 = inlined_call_operand.vmem [shape: s32[2,32,8], index: 0, kind: input, shape index: {}]   ;;  %s2806_s1 = inlined_call_operand.vmem [shape: f32[32,1], index: 1, kind: input, shape index: {}]   ;;  %s2807_s2 = inlined_call_operand.hbm [shape: bf16[384,128], index: 2, kind: input, shape index: {}]   ;;  %s2808_s3 = inlined_call_operand.vmem [shape: bf16[128,128], index: 3, kind: input, shape index: {}]   ;;  %s2809_s4 = inlined_call_operand.hbm [shape: f32[1,128], index: 4, kind: input, shape index: {}]   ;;  %s2810_s5 = inlined_call_operand.vmem [shape: bf16[128,128], index: 5, kind: input, shape index: {}]   ;;  %s2811_s6 = inlined_call_operand.vmem [shape: f32[1,128], index: 6, kind: input, shape index: {}]   ;;  %s2812_s7 = inlined_call_operand.hbm [shape: f32[32,128], index: 7, kind: output, shape index: {}]  }
   0x1   :  { %2826 = sst [smem:[#allocation20_spill]] %s2805_s0 }
   0x2   :  { %2827 = sst [smem:[#allocation21_spill]] %s2812_s7 }
   0x3   :  { %12 = vsyncpa [#allocation5], 0 }
   0x4   :  { %14 = vsyncpa [#allocation5 + $0x1], 0 }
   0x5   :  { %15 = vsyncpa [#allocation8], 0 }
   0x6   :  { %16 = vsyncpa [#allocation6], 0 }
   0x7   :  { %18 = vsyncpa [#allocation6 + $0x1], 0  ;;  %s2171_s24 = smov 0   ;;  %s2173_s25 = smov 0  }
   0x8   :  { %s2175_s26 = smov 0   ;;  %s2177_s27 = smov 0  }
   0x9   :  { %s2179_s28 = smov 0   ;;  %s2181_s29 = smov 0  }
   0xa   :  { %s2183_s30 = smov 0   ;;  %s2185_s8 = smov 0  }
   0xb   :  { %s2187_s9 = smov 0   ;;  %s2189_s10 = smov 0  }
   0xc   :  { %s2191_s11 = smov 0  }
   0xd LB: > { %2828 = sst [smem:[#allocation13_spill]] %s2007_s24  ;;  %s1354_s12 = sadd.s32 4294967295, %s2047_s11   ;;  %s2047_s11 = sphi %s2191_s11, %s24_s11   ;;  %s2043_s10 = sphi %s2189_s10, %s2900_s10   ;;  %s2039_s9 = sphi %s2187_s9, %s2899_s9   ;;  %s2035_s8 = sphi %s2185_s8, %s2898_s8   ;;  %s2031_s30 = sphi %s2183_s30, %s2897_s30   ;;  %s2027_s29 = sphi %s2181_s29, %s2896_s29   ;;  %s2023_s28 = sphi %s2179_s28, %s2895_s28   ;;  %s2019_s27 = sphi %s2177_s27, %s2894_s27   ;;  %s2015_s26 = sphi %s2175_s26, %s2893_s26   ;;  %s2011_s25 = sphi %s2173_s25, %s2892_s25   ;;  %s2007_s24 = sphi %s2171_s24, %s2891_s24  }
   0xe   : > { %s1355_s13 = sadd.s32 4294967294, %s2047_s11   ;;  %s33_s14 = sadd.s32 1, %s2039_s9 }
   0xf   : > { %s36_s15 = sadd.s32 1, %s2043_s10  ;;  %p34_p0 = scmp.ge.s32.totalorder %s33_s14, 3 }
  0x10   : > { %s43_s16 = sadd.s32 1, %s2027_s29  ;;  %p50_p1 = scmp.ne.s32.totalorder %s2027_s29, %s2023_s28 }
  0x11   : > { %p51_p2 = scmp.eq.s32.totalorder %s2047_s11, 0  ;;  %s2902_s14 = smov (%p34_p0, %s33_s14), 0 }
  0x12   : > { %2829 = sst [smem:[#allocation14_spill]] %s2902_s14  ;;  %s2904_s15 = smov (!%p34_p0, %s36_s15), %s2043_s10 }
  0x13   : > { %p2240_p3 = por %p51_p2, %p50_p1  ;;  %s92_s18 = ssub.s32 %s2039_s9, %s2902_s14 }
  0x14   : > { %p38_p4 = scmp.ge.s32.totalorder %s2904_s15, 2  ;;  %p93_p5 = scmp.eq.s32.totalorder %s92_s18, 0 }
  0x15   : > { %s2830_s17 = scalar_select %p2240_p3, 1, 0 }
  0x16   : > { %s95_s19 = sadd.s32 1, %s2019_s27  ;;  %p102_p6 = scmp.ne.s32.totalorder %s2019_s27, %s2015_s26 }
  0x17   : > { %s2906_s15 = smov (%p38_p4, %s2904_s15), 0  ;;  %p108_p9 = scmp.ne.s32.totalorder %s2015_s26, %s2011_s25 }
  0x18   : > { %2831 = sst [smem:[#allocation15_spill]] %s2906_s15  ;;  %s40_s21 = ssub.s32 %s2043_s10, %s2906_s15 }
  0x19   : > { %s2252_s20 = scalar_select %p93_p5, %s2019_s27, %s95_s19  }
  0x1a   : > { %p2256_p7 = por %p102_p6, %p51_p2  ;;  %p41_p8 = scmp.eq.s32.totalorder %s40_s21, 0 }
  0x1b   : > { %2832 = sst [smem:[#allocation16_spill]] %s2252_s20  ;;  %p2262_p10 = scmp.eq.s32.totalorder %s1354_s12, 0 }
  0x1c   : > { %s2833_s22 = scalar_select %p2256_p7, 1, 0 }
  0x1d   : > { %s2834_s23 = scalar_select %p2262_p10, 1, 0 }
  0x1e   : > { %p216_p11 = scmp.eq.s32.totalorder %s1354_s12, 5  ;;  %p2271_p12 = por %p2262_p10, %p108_p9 }
  0x1f   : > { %s2267_s18 = scalar_select %p41_p8, %s2027_s29, %s43_s16  }
  0x20   : > { %s2836_s19 = scalar_select %p2271_p12, 1, 0 }
  0x21   : > { %2835 = sst [smem:[#allocation17_spill]] %s2267_s18  ;;  %p2278_p13 = por %p216_p11, %p50_p1 }
  0x22   : > { %p221_p0 = scmp.ne.s32.totalorder %s2023_s28, %s2007_s24  ;;  %p222_p2 = scmp.eq.s32.totalorder %s1355_s13, 5 }
  0x23   : > { %s2837_s15 = scalar_select %p2278_p13, 1, 0 }
  0x24   : > { %p1356_p4 = scmp.ge.s32.totalorder %s2047_s11, 1  ;;  %p229_p5 = scmp.lt.s32.totalorder %s2047_s11, 7 }
  0x25   : > { %2838 = sst [smem:[#allocation18_spill]] %s2837_s15  ;;  %p2286_p6 = por %p222_p2, %p221_p0 }
  0x26   : > { %p2290_p8 = pnand %p1356_p4, %p229_p5  ;;  %s2117_s16 = smov [#allocation7]  }
  0x27   : > { %s2839_s25 = scalar_select %p2286_p6, 1, 0 }
  0x28   : > { %s2841_s12 = scalar_select %p2290_p8, 1, 0 }
  0x29   : > { %2840 = sst [smem:[#allocation19_spill]] %s2839_s25  ;;  %s245_s21 = sshll.u32 %s2117_s16, 4  ;;  %s246_s21 = int_to_ptr.vmem [resolvable:$true] %s245_s21 }
  0x2a   : > { %p1521_p1 = pneg %p2290_p8  ;;  %s1797_s20 = scalar_lea.hbm %s2809_s4, 16 }
  0x2b   : > { %p1798_p11 = scmp.ne.s32.totalorder %s2809_s4, %s1797_s20  ;;  %p1804_p5 = scmp.lt.u32.totalorder %s1797_s20, %s2809_s4 }
  0x2c   : > { %p2298_p9 = pnand %p1521_p1, %p2262_p10 }
  0x2e   : > { %p1799_p0 = pneg %p2298_p9 }
  0x30   : > { %p1800_p2 = pnand %p1799_p0, %p1798_p11 }
  0x32   : > { %p1801_p4 = pneg %p1800_p2 }
  0x34   : > { %p1806_p1 = pnand %p1804_p5, %p1801_p4 }
  0x36   : > { %1809 = shalt.err (!%p1806_p1)
}
  0x37   : > { %s1810_s15 = scalar_lea.vmem %s246_s21, 16  ;;  %s1817_s18 = scalar_lea.vmem %s246_s21, 32 }
  0x38   : > { %p1811_p6 = scmp.ne.s32.totalorder %s246_s21, %s1810_s15  ;;  %p1818_p12 = scmp.lt.s32.totalorder %s246_s21, %s246_s21 }
  0x39   : > { %p1819_p8 = scmp.lt.s32.totalorder %s1817_s18, %s1810_s15 }
  0x3a   : > { %p1813_p13 = pnand %p1811_p6, %p1799_p0 }
  0x3b   : > { %p1820_p7 = por %p1819_p8, %p1818_p12 }
  0x3c   : > { %p1814_p10 = pneg %p1813_p13 }
  0x3e   : > { %p1821_p3 = pnand %p1820_p7, %p1814_p10 }
  0x40   : > { %1824 = shalt.err (!%p1821_p3)
}
  0x41   : > { %1524 = dma.hbm_to_vmem [thread:$0]  (!%p2298_p9), %s2809_s4, 16, %s246_s21, [#allocation8]  }
  0x42   : > { %p1358_p11 = scmp.ge.s32.totalorder %s2047_s11, 6 }
  0x43   : > { %p2843_p2 = scmp.ne.s32.totalorder (!%p1358_p11), %s2830_s17, 0 }
  0x44   : > { %258 = sbr.rel (%p1358_p11) target bundleno = 114 (0x72), region = 32 }
  0x4b   : > { %261 = sbr.rel (!%p2843_p2) target bundleno = 87 (0x57), region = 36  ;;  %s263_s7 = sand.u32 (%p2843_p2), 1, %s2027_s29  }
  0x4c   : > { %s1423_s20 = sshll.u32 (%p2843_p2), %s2043_s10, 4  ;;  %s1359_s15 = sshll.u32 (%p2843_p2), %s263_s7, 5 }
  0x4d   : > { %s2844_s0 = sld [smem:[#allocation20_spill]] (%p2843_p2)  ;;  %s265_s14 = scalar_lea.vmem (%p2843_p2), [#allocation3], %s1359_s15 }
  0x53   : > { %s268_s18 = scalar_lea.vmem %s2844_s0, %s1423_s20 }
  0x54   : > { %v302_v0 = vld [vmem:[%s268_s18] sm:$0xff]  ;;  %v304_v1 = vld [vmem:[%s268_s18 + $0x8] sm:$0xff] }
  0x55   : > { %v306_v2 = vld [vmem:[%s268_s18 + $0x20] sm:$0xff]  ;;  %303 = vst [vmem:[%s265_s14] sm:$0xff] %v302_v0  ;;  %305 = vst [vmem:[%s265_s14 + $0x8] sm:$0xff] %v304_v1  ;;  %v308_v3 = vld [vmem:[%s268_s18 + $0x28] sm:$0xff] }
  0x56   : > { %307 = vst [vmem:[%s265_s14 + $0x10] sm:$0xff] %v306_v2  ;;  %309 = vst [vmem:[%s265_s14 + $0x18] sm:$0xff] %v308_v3 }
  0x57 PF: > { %s325_s17 = sand.u32 1, %s2019_s27   ;;  %s1424_s21 = sshll.u32 %s2039_s9, 10 }
  0x58   : > { %s1362_s24 = sshll.u32 %s325_s17, 6  ;;  %s2331_s20 = scalar_lea.hbm %s2807_s2, %s1424_s21 }
  0x59   : > { %s329_s15 = scalar_lea.vmem [#allocation4], %s1362_s24  ;;  %s2335_s16 = scalar_lea.sflag [#allocation5], %s325_s17 }
  0x5a   : > { %s336_s13 = sshll.u32 %s329_s15, 4  ;;  %s1825_s18 = scalar_lea.hbm %s2331_s20, 1024  ;;  %s2333_s13 = int_to_ptr.vmem [resolvable:$true] %s336_s13 }
  0x5b   : > { %p1826_p3 = scmp.ne.s32.totalorder %s2331_s20, %s1825_s18  ;;  %p2845_p7 = scmp.ne.s32.totalorder %s2833_s22, 0 }
  0x5c   : > { %s1829_s21 = scalar_lea.hbm %s2807_s2, 3072  ;;  %p1830_p13 = scmp.lt.u32.totalorder %s2331_s20, %s2807_s2 }
  0x5d   : > { %p1827_p10 = pnand %p1826_p3, %p2845_p7  ;;  %p1831_p6 = scmp.lt.u32.totalorder %s1829_s21, %s1825_s18 }
  0x5e   : > { %p1833_p9 = scmp.lt.u32.totalorder %s1825_s18, %s2331_s20 }
  0x5f   : > { %p1828_p12 = pneg %p1827_p10  ;;  %p1832_p8 = por %p1831_p6, %p1830_p13 }
  0x61   : > { %p1834_p0 = por %p1833_p9, %p1832_p8 }
  0x63   : > { %p1835_p4 = pnand %p1834_p0, %p1828_p12 }
  0x65   : > { %1838 = shalt.err (!%p1835_p4)
}
  0x66   : > { %s1839_s17 = scalar_lea.vmem %s2333_s13, 1024  ;;  %s2118_s0 = smov [#allocation4]  }
  0x67   : > { %p1840_p5 = scmp.ne.s32.totalorder %s2333_s13, %s1839_s17  ;;  %s1843_s24 = sshll.u32 %s2118_s0, 4  ;;  %s1844_s24 = int_to_ptr.vmem [resolvable:$false] %s1843_s24 }
  0x68   : > { %s1845_s15 = scalar_lea.vmem %s1844_s24, 2048  ;;  %p1846_p2 = scmp.lt.s32.totalorder %s2333_s13, %s1844_s24 }
  0x69   : > { %p1841_p1 = pnand %p1840_p5, %p2845_p7  ;;  %p1847_p3 = scmp.lt.s32.totalorder %s1845_s15, %s1839_s17 }
  0x6b   : > { %p1842_p11 = pneg %p1841_p1  ;;  %p1848_p10 = por %p1847_p3, %p1846_p2 }
  0x6d   : > { %p1849_p13 = pnand %p1848_p10, %p1842_p11 }
  0x6f   : > { %1852 = shalt.err (!%p1849_p13)
}
  0x70   : > { %s2119_s18 = smov 64   ;;  %s2120_s14 = smov 4  }
  0x71   : > { %1515 = dma.hbm_to_vmem [thread:$0]  (%p2845_p7), %s2331_s20, 1024, %s2333_s13, %s2335_s16, %s2119_s18, %s2119_s18, %s2120_s14  }
  0x72 PF: > { %p2846_p12 = scmp.ne.s32.totalorder %s2841_s12, 0 }
  0x73   : > { %s2362_s21 = sand.u32 (!%p2846_p12), 1, %s2023_s28   ;;  %s357_s25 = sand.u32 (!%p2846_p12), 1, %s2015_s26  }
  0x74   : > { %348 = sbr.rel (%p2846_p12) target bundleno = 1038 (0x40e), region = 82  ;;  %s1366_s7 = sshll.u32 (!%p2846_p12), %s2362_s21, 5 }
  0x75   : > { %s1367_s17 = sshll.u32 (!%p2846_p12), %s357_s25, 6  ;;  %s2366_s0 = scalar_lea.vmem (!%p2846_p12), [#allocation3], %s1366_s7 }
  0x76   : > { %s358_s24 = scalar_lea.sflag (!%p2846_p12), [#allocation5], %s357_s25  ;;  %s2368_s15 = scalar_lea.vmem (!%p2846_p12), [#allocation4], %s1367_s17 }
  0x77   : > { %p2847_p6 = scmp.ne.s32.totalorder (!%p2846_p12), %s2836_s19, 0 }
  0x7b   : > { %1994 = dma.done.wait (%p2847_p6), %s358_s24, 1024  }
  0x7c   : > { %1996 = vsyncadd (%p2847_p6), %s358_s24, 4294966272  ;;  %p2848_p7 = scmp.ne.s32.totalorder %s2834_s23, 0 }
  0x7e   : > { %1998 = dma.done.wait (%p2848_p7), [#allocation8], 16  }
  0x7f   : > { %2000 = vsyncadd (%p2848_p7), [#allocation8], 4294967280  ;;  %s1369_s22 = sshll.u32 %s2362_s21, 4  ;;  %s1370_s12 = sshll.u32 %s2035_s8, 1 }
  0x80   : > { %p407_p8 = scmp.lt.s32.totalorder %s1370_s12, 3  ;;  %s2385_s19 = scalar_lea.vmem [#allocation9], %s1369_s22 }
  0x81   : > { %p1372_p9 = scmp.ne.s32.totalorder %s2031_s30, 0 }
  0x82   : > { %s2908_s12 = smov (!%p407_p8, %s1370_s12), 3  ;;  %v2121_v4 = vmov (!%p1372_p9), 0.0  }
  0x83   : > { %s1371_s20 = sshll.u32 %s2908_s12, 3  ;;  %418 = sbr.rel (%p1372_p9) target bundleno = 138 (0x8a), region = 98  ;;  %419 = vst [vmem:[#allocation2] sm:$0xff] (!%p1372_p9), %v2121_v4  ;;  %420 = vst [vmem:[#allocation2 + $0x8] sm:$0xff] (!%p1372_p9), %v2121_v4 }
  0x84   : > { %s2383_s18 = scalar_lea.vmem %s2806_s1, %s1371_s20 }
  0x8a PF: > { %v421_v5 = vlaneseq  ;;  %v2391_v7 = vmov 0.0   ;;  %v2393_v8 = vmov 0.0   ;;  %v2395_v9 = vmov 0.0   ;;  %s2423_s23 = smov 0  }
  0x8b   : > { %v2397_v10 = vmov 0.0   ;;  %v2399_v11 = vmov 0.0   ;;  %v2401_v12 = vmov 0.0   ;;  %v2403_v13 = vmov 0.0  }
  0x8c   : > { %v2389_v6 = vand.u32 127, %v421_v5  ;;  %v2405_v14 = vmov 0.0   ;;  %v2407_v15 = vmov 0.0   ;;  %v2409_v16 = vmov 0.0  }
  0x8d   : > { %v2411_v17 = vmov 0.0   ;;  %v2413_v18 = vmov 0.0   ;;  %v2415_v19 = vmov 0.0   ;;  %v2417_v20 = vmov 0.0  }
  0x8e   : > { %v2419_v21 = vmov 0.0   ;;  %v2421_v22 = vmov 0.0  }
  0x8f LB: >> { %s1374_s14 = sshll.u32 %s2031_s30, 7  ;;  %v454_v23 = vshrl.u32 %v421_v5, 7  ;;  %s1373_s25 = sshll.u32 %s2115_s23, 4  ;;  %v2122_v55 = vmov 0.0   ;;  %s2115_s23 = sphi %s2423_s23, %s428_s23   ;;  %v2111_v22 = vphi %v2421_v22, %v2880_v22   ;;  %v2107_v21 = vphi %v2419_v21, %v2879_v21   ;;  %v2103_v20 = vphi %v2417_v20, %v2878_v20   ;;  %v2099_v19 = vphi %v2415_v19, %v2877_v19   ;;  %v2095_v18 = vphi %v2413_v18, %v2876_v18   ;;  %v2091_v17 = vphi %v2411_v17, %v2875_v17   ;;  %v2087_v16 = vphi %v2409_v16, %v2874_v16   ;;  %v2083_v15 = vphi %v2407_v15, %v2873_v15   ;;  %v2079_v14 = vphi %v2405_v14, %v2872_v14   ;;  %v2075_v13 = vphi %v2403_v13, %v2871_v13   ;;  %v2071_v12 = vphi %v2401_v12, %v2870_v12   ;;  %v2067_v11 = vphi %v2399_v11, %v2869_v11   ;;  %v2063_v10 = vphi %v2397_v10, %v2868_v10   ;;  %v2059_v9 = vphi %v2395_v9, %v2867_v9   ;;  %v2055_v8 = vphi %v2393_v8, %v2866_v8   ;;  %v2051_v7 = vphi %v2391_v7, %v2865_v7  }
  0x90   : >> { %v450_v24 = vstv %s1374_s14  ;;  %s446_s7 = scalar_lea.vmem %s2366_s0, %s1373_s25 [#allocation3]  ;;  %s428_s23 = sadd.s32 1, %s2115_s23  }
  0x91   : >> { %v469_v25 = vsub.s32 2, %v454_v23  ;;  %v455_v26 = vsub.s32 0, %v454_v23  ;;  %v447_v27 = vld [vmem:[%s446_s7] sm:$0xff]  ;;  %v476_v29 = vsub.s32 3, %v454_v23  ;;  %v462_v30 = vsub.s32 1, %v454_v23  ;;  %v448_v41 = vld [vmem:[%s446_s7 + $0x8] sm:$0xff] }
  0x92   : >> { %v451_v28 = vsub.s32 %v447_v27, %v450_v24  ;;  %v490_v35 = vsub.s32 5, %v454_v23  ;;  %v483_v36 = vsub.s32 4, %v454_v23  ;;  %v504_v39 = vsub.s32 7, %v454_v23  ;;  %p2559_p0 = scmp.ge.s32.totalorder %s428_s23, 2  }
  0x93   : >> { %v497_v40 = vsub.s32 6, %v454_v23  ;;  %v452_v44 = vsub.s32 %v448_v41, %v450_v24  ;;  %p1399_p4 = scmp.ne.s32.totalorder (%p2559_p0), %s2031_s30, 2 }
  0x94   : >> { %v470_v31 = vrot.slane %v451_v28, %v469_v25  ;;  %v456_v32 = vrot.slane %v451_v28, %v455_v26  ;;  %v477_v33 = vrot.slane %v451_v28, %v476_v29  ;;  %v463_v34 = vrot.slane %v451_v28, %v462_v30 }
  0x95   : >> { %v491_v37 = vrot.slane %v451_v28, %v490_v35  ;;  %v484_v38 = vrot.slane %v451_v28, %v483_v36  ;;  %v505_v42 = vrot.slane %v451_v28, %v504_v39  ;;  %v498_v43 = vrot.slane %v451_v28, %v497_v40 }
  0x96   : >> { %472 = vbcast.lane.b32.xlu1 %v470_v31, 256  ;;  %458 = vbcast.lane.b32.xlu0 %v456_v32, 256  ;;  %v519_v45 = vrot.slane %v452_v44, %v462_v30  ;;  %v512_v46 = vrot.slane %v452_v44, %v455_v26  ;;  %v533_v47 = vrot.slane %v452_v44, %v476_v29 }
  0x97   : >> { %v526_v48 = vrot.slane %v452_v44, %v469_v25  ;;  %v547_v49 = vrot.slane %v452_v44, %v490_v35  ;;  %v540_v50 = vrot.slane %v452_v44, %v483_v36  ;;  %v561_v51 = vrot.slane %v452_v44, %v504_v39 }
  0x98   : >> { %v554_v52 = vrot.slane %v452_v44, %v497_v40 }
  0x9a   : >> { %479 = vbcast.lane.b32.xlu1 %v477_v33, 256  ;;  %465 = vbcast.lane.b32.xlu0 %v463_v34, 256 }
  0x9e   : >> { %493 = vbcast.lane.b32.xlu1 %v491_v37, 256  ;;  %486 = vbcast.lane.b32.xlu0 %v484_v38, 256 }
  0xa2   : >> { %507 = vbcast.lane.b32.xlu1 %v505_v42, 256  ;;  %500 = vbcast.lane.b32.xlu0 %v498_v43, 256 }
  0xa6   : >> { %521 = vbcast.lane.b32.xlu1 %v519_v45, 256  ;;  %514 = vbcast.lane.b32.xlu0 %v512_v46, 256 }
  0xaa   : >> { %535 = vbcast.lane.b32.xlu1 %v533_v47, 256  ;;  %528 = vbcast.lane.b32.xlu0 %v526_v48, 256 }
  0xae   : >> { %549 = vbcast.lane.b32.xlu1 %v547_v49, 256  ;;  %542 = vbcast.lane.b32.xlu0 %v540_v50, 256 }
  0xb2   : >> { %563 = vbcast.lane.b32.xlu1 %v561_v51, 256  ;;  %556 = vbcast.lane.b32.xlu0 %v554_v52, 256 }
 0x108   : >> { %v473_v53 = vpop.permute.xlu1 %472  ;;  %v459_v54 = vpop.permute.xlu0 %458 }
 0x109   : >> { %vm567_vm0 = vcmp.eq.s32.totalorder %v473_v53, %v2389_v6  ;;  %vm565_vm1 = vcmp.eq.s32.totalorder %v459_v54, %v2389_v6 }
 0x10a   : >> { %v1377_v56 = vsel %vm567_vm0, 1.0, %v2122_v55  ;;  %v1375_v57 = vsel %vm565_vm1, 1.0, %v2122_v55  ;;  %vm2124_vm0 = vmmov (%p2559_p0), 0   ;;  %vm791_vm1 = vcmask (%p2559_p0), 1041409  }
 0x10b   : >> { %v625_v58 = vrot.slane %v1377_v56, 4  ;;  %v613_v59 = vrot.slane %v1375_v57, 4 }
 0x10c   : >> { %v480_v60 = vpop.permute.xlu1 %479  ;;  %v466_v61 = vpop.permute.xlu0 %465 }
 0x10d   : >> { %v626_v62 = vadd.f32 %v1377_v56, %v625_v58  ;;  %v614_v63 = vadd.f32 %v1375_v57, %v613_v59  ;;  %vm568_vm2 = vcmp.eq.s32.totalorder %v480_v60, %v2389_v6  ;;  %vm566_vm3 = vcmp.eq.s32.totalorder %v466_v61, %v2389_v6 }
 0x10e   : >> { %v1378_v0 = vsel %vm568_vm2, 1.0, %v2122_v55  ;;  %v1376_v1 = vsel %vm566_vm3, 1.0, %v2122_v55  ;;  %vm793_vm2 = vcmask (%p2559_p0), 1042434   ;;  %vm795_vm3 = vcmask (%p2559_p0), 1043459  }
 0x10f   : >> { %v627_v2 = vrot.slane %v626_v62, 2  ;;  %v615_v3 = vrot.slane %v614_v63, 2  ;;  %v631_v4 = vrot.slane %v1378_v0, 4  ;;  %v619_v23 = vrot.slane %v1376_v1, 4 }
 0x110   : >> { %v494_v24 = vpop.permute.xlu1 %493  ;;  %v487_v25 = vpop.permute.xlu0 %486 }
 0x111   : >> { %v628_v26 = vadd.f32 %v627_v2, %v626_v62  ;;  %v616_v27 = vadd.f32 %v615_v3, %v614_v63  ;;  %v632_v28 = vadd.f32 %v1378_v0, %v631_v4  ;;  %v620_v29 = vadd.f32 %v1376_v1, %v619_v23 }
 0x112   : >> { %vm570_vm4 = vcmp.eq.s32.totalorder %v494_v24, %v2389_v6  ;;  %vm569_vm5 = vcmp.eq.s32.totalorder %v487_v25, %v2389_v6 }
 0x113   : >> { %v629_v30 = vrot.slane %v628_v26, 1  ;;  %v617_v31 = vrot.slane %v616_v27, 1  ;;  %v633_v32 = vrot.slane %v632_v28, 2  ;;  %v621_v33 = vrot.slane %v620_v29, 2 }
 0x114   : >> { %v1380_v34 = vsel %vm570_vm4, 1.0, %v2122_v55  ;;  %v1379_v35 = vsel %vm569_vm5, 1.0, %v2122_v55  ;;  %v508_v36 = vpop.permute.xlu1 %507  ;;  %v501_v37 = vpop.permute.xlu0 %500  ;;  %vm797_vm4 = vcmask (%p2559_p0), 1044484   ;;  %vm799_vm5 = vcmask (%p2559_p0), 1045509  }
 0x115   : >> { %v630_v38 = vadd.f32 %v629_v30, %v628_v26  ;;  %v618_v39 = vadd.f32 %v617_v31, %v616_v27  ;;  %v634_v40 = vadd.f32 %v633_v32, %v632_v28  ;;  %v622_v41 = vadd.f32 %v621_v33, %v620_v29 }
 0x116   : >> { %v643_v42 = vrot.slane %v1380_v34, 4  ;;  %v637_v43 = vrot.slane %v1379_v35, 4  ;;  %vm572_vm6 = vcmp.eq.s32.totalorder %v508_v36, %v2389_v6  ;;  %vm571_vm7 = vcmp.eq.s32.totalorder %v501_v37, %v2389_v6 }
 0x117   : >> { %v2495_v20 = vadd.f32 %v2103_v20, %v630_v38   ;;  %v2498_v22 = vadd.f32 %v2111_v22, %v618_v39   ;;  %v635_v46 = vrot.slane %v634_v40, 1  ;;  %v623_v47 = vrot.slane %v622_v41, 1 }
 0x118   : >> { %v644_v48 = vadd.f32 %v1380_v34, %v643_v42  ;;  %v638_v49 = vadd.f32 %v1379_v35, %v637_v43  ;;  %v1382_v50 = vsel %vm572_vm6, 1.0, %v2122_v55  ;;  %v1381_v51 = vsel %vm571_vm7, 1.0, %v2122_v55  ;;  %v522_v52 = vpop.permute.xlu1 %521  ;;  %v515_v53 = vpop.permute.xlu0 %514 }
 0x119   : >> { %v2849_v44 = vmov %v2495_v20  ;;  %v2850_v45 = vmov %v2498_v22  ;;  %v636_v54 = vadd.f32 %v635_v46, %v634_v40  ;;  %v624_v56 = vadd.f32 %v623_v47, %v622_v41 }
 0x11a   : >> { %v655_v57 = vrot.slane %v1382_v50, 4  ;;  %v649_v58 = vrot.slane %v1381_v51, 4  ;;  %v645_v59 = vrot.slane %v644_v48, 2  ;;  %v639_v60 = vrot.slane %v638_v49, 2 }
 0x11b   : >> { %vm574_vm8 = vcmp.eq.s32.totalorder %v522_v52, %v2389_v6  ;;  %vm573_vm9 = vcmp.eq.s32.totalorder %v515_v53, %v2389_v6  ;;  %v2505_v19 = vadd.f32 %v2099_v19, %v636_v54   ;;  %v2508_v21 = vadd.f32 %v2107_v21, %v624_v56  }
 0x11c   : >> { %v656_v20 = vadd.f32 %v1382_v50, %v655_v57  ;;  %v650_v22 = vadd.f32 %v1381_v51, %v649_v58  ;;  %v646_v63 = vadd.f32 %v645_v59, %v644_v48  ;;  %v640_v0 = vadd.f32 %v639_v60, %v638_v49  ;;  %v536_v3 = vpop.permute.xlu1 %535  ;;  %v529_v4 = vpop.permute.xlu0 %528 }
 0x11d   : >> { %v2851_v61 = vmov %v2505_v19  ;;  %v2852_v62 = vmov %v2508_v21  ;;  %v1384_v1 = vsel %vm574_vm8, 1.0, %v2122_v55  ;;  %v1383_v2 = vsel %vm573_vm9, 1.0, %v2122_v55 }
 0x11e   : >> { %v657_v23 = vrot.slane %v656_v20, 2  ;;  %v651_v24 = vrot.slane %v650_v22, 2  ;;  %v667_v25 = vrot.slane %v1384_v1, 4  ;;  %v661_v26 = vrot.slane %v1383_v2, 4 }
 0x11f   : >> { %v647_v27 = vrot.slane %v646_v63, 1  ;;  %v641_v28 = vrot.slane %v640_v0, 1  ;;  %vm576_vm10 = vcmp.eq.s32.totalorder %v536_v3, %v2389_v6  ;;  %vm575_vm11 = vcmp.eq.s32.totalorder %v529_v4, %v2389_v6 }
 0x120   : >> { %v658_v19 = vadd.f32 %v657_v23, %v656_v20  ;;  %v652_v21 = vadd.f32 %v651_v24, %v650_v22  ;;  %v668_v29 = vadd.f32 %v1384_v1, %v667_v25  ;;  %v662_v30 = vadd.f32 %v1383_v2, %v661_v26  ;;  %v550_v35 = vpop.permute.xlu1 %549  ;;  %v543_v36 = vpop.permute.xlu0 %542 }
 0x121   : >> { %v648_v31 = vadd.f32 %v647_v27, %v646_v63  ;;  %v642_v32 = vadd.f32 %v641_v28, %v640_v0  ;;  %v1386_v33 = vsel %vm576_vm10, 1.0, %v2122_v55  ;;  %v1385_v34 = vsel %vm575_vm11, 1.0, %v2122_v55 }
 0x122   : >> { %v659_v37 = vrot.slane %v658_v19, 1  ;;  %v653_v38 = vrot.slane %v652_v21, 1  ;;  %v669_v39 = vrot.slane %v668_v29, 2  ;;  %v663_v40 = vrot.slane %v662_v30, 2 }
 0x123   : >> { %v2517_v17 = vadd.f32 %v2091_v17, %v648_v31   ;;  %v2520_v18 = vadd.f32 %v2095_v18, %v642_v32   ;;  %v679_v43 = vrot.slane %v1386_v33, 4  ;;  %v673_v46 = vrot.slane %v1385_v34, 4 }
 0x124   : >> { %v660_v47 = vadd.f32 %v659_v37, %v658_v19  ;;  %v654_v48 = vadd.f32 %v653_v38, %v652_v21  ;;  %v670_v49 = vadd.f32 %v669_v39, %v668_v29  ;;  %v664_v50 = vadd.f32 %v663_v40, %v662_v30  ;;  %v564_v56 = vpop.permute.xlu1 %563  ;;  %v557_v57 = vpop.permute.xlu0 %556 }
 0x125   : >> { %v2853_v41 = vmov %v2517_v17  ;;  %v2854_v42 = vmov %v2520_v18  ;;  %v680_v51 = vadd.f32 %v1386_v33, %v679_v43  ;;  %v674_v52 = vadd.f32 %v1385_v34, %v673_v46 }
 0x126   : >> { %vm578_vm12 = vcmp.eq.s32.totalorder %v550_v35, %v2389_v6  ;;  %vm577_vm13 = vcmp.eq.s32.totalorder %v543_v36, %v2389_v6  ;;  %v2525_v15 = vadd.f32 %v2083_v15, %v660_v47   ;;  %v2528_v16 = vadd.f32 %v2087_v16, %v654_v48  }
 0x127   : >> { %v671_v17 = vrot.slane %v670_v49, 1  ;;  %v665_v18 = vrot.slane %v664_v50, 1  ;;  %v681_v58 = vrot.slane %v680_v51, 2  ;;  %v675_v59 = vrot.slane %v674_v52, 2 }
 0x128   : >> { %v2855_v53 = vmov %v2525_v15  ;;  %v2856_v54 = vmov %v2528_v16  ;;  %v1388_v60 = vsel %vm578_vm12, 1.0, %v2122_v55  ;;  %v1387_v20 = vsel %vm577_vm13, 1.0, %v2122_v55 }
 0x129   : >> { %v672_v22 = vadd.f32 %v671_v17, %v670_v49  ;;  %v666_v63 = vadd.f32 %v665_v18, %v664_v50  ;;  %v691_v0 = vrot.slane %v1388_v60, 4  ;;  %v685_v1 = vrot.slane %v1387_v20, 4 }
 0x12a   : >> { %v682_v2 = vadd.f32 %v681_v58, %v680_v51  ;;  %v676_v3 = vadd.f32 %v675_v59, %v674_v52  ;;  %vm580_vm14 = vcmp.eq.s32.totalorder %v564_v56, %v2389_v6  ;;  %vm579_vm15 = vcmp.eq.s32.totalorder %v557_v57, %v2389_v6  ;;  %v1768_v57 = vld [vmem:[%s2368_s15] sm:$0xff] (%p2559_p0)  }
 0x12b   : >> { %v2535_v13 = vadd.f32 %v2075_v13, %v672_v22   ;;  %v2538_v14 = vadd.f32 %v2079_v14, %v666_v63   ;;  %v692_v15 = vadd.f32 %v1388_v60, %v691_v0  ;;  %v686_v16 = vadd.f32 %v1387_v20, %v685_v1 }
 0x12c   : >> { %v683_v24 = vrot.slane %v682_v2, 1  ;;  %v677_v25 = vrot.slane %v676_v3, 1  ;;  %v1390_v26 = vsel %vm580_vm14, 1.0, %v2122_v55  ;;  %v1389_v27 = vsel %vm579_vm15, 1.0, %v2122_v55 }
 0x12d   : >> { %v2857_v4 = vmov %v2535_v13  ;;  %v2858_v23 = vmov %v2538_v14  ;;  %v693_v28 = vrot.slane %v692_v15, 2  ;;  %v687_v19 = vrot.slane %v686_v16, 2 }
 0x12e   : >> { %v703_v21 = vrot.slane %v1390_v26, 4  ;;  %v697_v29 = vrot.slane %v1389_v27, 4  ;;  %v684_v30 = vadd.f32 %v683_v24, %v682_v2  ;;  %v678_v31 = vadd.f32 %v677_v25, %v676_v3 }
 0x12f   : >> { %v694_v32 = vadd.f32 %v693_v28, %v692_v15  ;;  %v688_v33 = vadd.f32 %v687_v19, %v686_v16  ;;  %v2873_v15 = vmov %v2855_v53  ;;  %v2874_v16 = vmov %v2856_v54 }
 0x130   : >> { %v704_v13 = vadd.f32 %v1390_v26, %v703_v21  ;;  %v698_v34 = vadd.f32 %v1389_v27, %v697_v29  ;;  %v2543_v11 = vadd.f32 %v2067_v11, %v684_v30   ;;  %v719_v36 = vadd.f32 %v2071_v12, %v678_v31   ;;  %v1772_v26 = vld [vmem:[%s2368_s15 + $0x20] sm:$0xff] (%p2559_p0)  }
 0x131   : >> { %v695_v14 = vrot.slane %v694_v32, 1  ;;  %v689_v37 = vrot.slane %v688_v33, 1  ;;  %v2875_v17 = vmov %v2853_v41  ;;  %v2876_v18 = vmov %v2854_v42 }
 0x132   : >> { %v2859_v35 = vmov %v2543_v11  ;;  %v705_v38 = vrot.slane %v704_v13, 2  ;;  %v699_v39 = vrot.slane %v698_v34, 2  ;;  %v2870_v12 = vmov %v719_v36 }
 0x133   : >> { %v696_v55 = vadd.f32 %v695_v14, %v694_v32  ;;  %v690_v40 = vadd.f32 %v689_v37, %v688_v33  ;;  %v2872_v14 = vmov %v2858_v23  ;;  %v2877_v19 = vmov %v2851_v61  ;;  %v1770_v12 = vld [vmem:[%s2368_s15 + $0x10] sm:$0xff] (%p2559_p0)   ;;  %v1773_v32 = vld [vmem:[%s2368_s15 + $0x28] sm:$0xff] (%p2559_p0)  }
 0x134   : >> { %v706_v43 = vadd.f32 %v705_v38, %v704_v13  ;;  %v700_v46 = vadd.f32 %v699_v39, %v698_v34  ;;  %v2871_v13 = vmov %v2857_v4  ;;  %v2878_v20 = vmov %v2849_v44  ;;  %v1774_v14 = vld [vmem:[%s2368_s15 + $0x30] sm:$0xff] (%p2559_p0)  }
 0x135   : >> { %v2547_v9 = vadd.f32 %v2059_v9, %v696_v55   ;;  %v2550_v10 = vadd.f32 %v2063_v10, %v690_v40   ;;  %v2879_v21 = vmov %v2852_v62  ;;  %v2880_v22 = vmov %v2850_v45  ;;  %v1775_v55 = vld [vmem:[%s2368_s15 + $0x38] sm:$0xff] (%p2559_p0)  }
 0x136   : >> { %v707_v49 = vrot.slane %v706_v43, 1  ;;  %v701_v50 = vrot.slane %v700_v46, 1  ;;  %v2123_v58 = vmov (%p2559_p0), 0.0   ;;  %v727_v59 = vpack.c.bf16 (%p2559_p0), %v2850_v45, %v2850_v45  ;;  %v1769_v22 = vld [vmem:[%s2368_s15 + $0x8] sm:$0xff] (%p2559_p0)  }
 0x137   : >> { %v2860_v47 = vmov %v2547_v9  ;;  %v2861_v48 = vmov %v2550_v10  ;;  %427 = sbr.rel (!%p2559_p0) target bundleno = 143 (0x8f), region = 162  ;;  %1453 = vmatprep.subr.bf16.mxu0 (%p2559_p0), %v2123_v58  ;;  %v728_v60 = vpack.c.bf16 (%p2559_p0), %v2852_v62, %v2852_v62  ;;  %1469 = vmatprep.mubr.msk.bf16.mxu0 (%p2559_p0), %vm2124_vm0, %v2123_v58  ;;  %v735_v5 = vpack.c.bf16 (%p2559_p0), %v2858_v23, %v2858_v23 }
 0x138   : >> { %v708_v51 = vadd.f32 %v707_v49, %v706_v43  ;;  %v702_v11 = vadd.f32 %v701_v50, %v700_v46  ;;  %v2867_v9 = vmov %v2860_v47  ;;  %v2868_v10 = vmov %v2861_v48  ;;  %1454 = vmatpush3.bf16.msra.mxu0 (%p2559_p0), %v1768_v57  ;;  %v726_v49 = vld [vmem:[#allocation2 + $0x8] sm:$0xff] (%p2559_p0) }
 0x139   : > { %1455 = vmatprep.subr.bf16.mxu0 (%p2559_p0), %v2123_v58  ;;  %v729_v6 = vpack.c.bf16 (%p2559_p0), %v2849_v44, %v2849_v44  ;;  %v775_v9 = vunpack.c.l.b16 (%p2559_p0), %v727_v59  ;;  %v776_v10 = vunpack.c.l.b16 (%p2559_p0), %v728_v60  ;;  %v730_v45 = vpack.c.bf16 (%p2559_p0), %v2851_v61, %v2851_v61  ;;  %v1771_v61 = vld [vmem:[%s2368_s15 + $0x18] sm:$0xff] (%p2559_p0)  }
 0x13a   : >> { %v2553_v7 = vadd.f32 %v2051_v7, %v708_v51   ;;  %v2556_v8 = vadd.f32 %v2055_v8, %v702_v11   ;;  %v2869_v11 = vmov %v2859_v35  ;;  %v738_v62 = vpack.c.bf16 (%p2559_p0), %v2859_v35, %v2859_v35 }
 0x13b   : > { %v783_v17 = vunpack.c.l.b16 (%p2559_p0), %v735_v5  ;;  %v777_v44 = vunpack.c.l.b16 (%p2559_p0), %v729_v6  ;;  %v731_v63 = vpack.c.bf16 (%p2559_p0), %v2854_v42, %v2854_v42  ;;  %v739_v0 = vpack.c.bf16 (%p2559_p0), %v2861_v48, %v2861_v48 }
 0x13c   : >> { %v2862_v52 = vmov %v2553_v7  ;;  %v2863_v56 = vmov %v2556_v8  ;;  %1456 = vmatpush3.bf16.msra.mxu0 (%p2559_p0), %v1769_v22  ;;  %v792_v1 = vsel (%p2559_p0), %vm791_vm1, %v776_v10, %v775_v9  ;;  %v778_v2 = vunpack.c.l.b16 (%p2559_p0), %v730_v45 }
 0x13d   : >> { %v2865_v7 = vmov %v2862_v52  ;;  %v2866_v8 = vmov %v2863_v56  ;;  %1457 = vmatprep.subr.bf16.mxu0 (%p2559_p0), %v2123_v58  ;;  %v786_v3 = vunpack.c.l.b16 (%p2559_p0), %v738_v62  ;;  %v794_v23 = vsel (%p2559_p0), %vm793_vm2, %v777_v44, %v792_v1 }
 0x13e   : > { %v736_v7 = vpack.c.bf16 %v2857_v4, %v2857_v4  ;;  %v737_v8 = vpack.c.bf16 %v719_v36, %v719_v36  ;;  %v732_v16 = vpack.c.bf16 %v2853_v41, %v2853_v41  ;;  %v740_v42 = vpack.c.bf16 %v2860_v47, %v2860_v47  ;;  %v725_v47 = vld [vmem:[#allocation2] sm:$0xff]  ;;  %v914_v22 = vld [vmem:[%s2383_s18 + $0x8] sm:$0xff] (!%p1399_p4)  ;;  %v1779_v6 = vld [vmem:[%s2808_s3 + $0x10] sm:$0xff] (!%p1399_p4)  }
 0x13f   : > { %v779_v24 = vunpack.c.l.b16 %v731_v63  ;;  %v787_v25 = vunpack.c.l.b16 %v739_v0  ;;  %v796_v27 = vsel %vm795_vm3, %v778_v2, %v794_v23  ;;  %v733_v19 = vpack.c.bf16 %v2856_v54, %v2856_v54  ;;  %v913_v57 = vld [vmem:[%s2383_s18] sm:$0xff] (!%p1399_p4)  ;;  %v1778_v5 = vld [vmem:[%s2808_s3 + $0x8] sm:$0xff] (!%p1399_p4)   ;;  %v1784_v62 = vld [vmem:[%s2808_s3 + $0x38] sm:$0xff] (!%p1399_p4)  }
 0x140   : > { %v784_v18 = vunpack.c.l.b16 %v736_v7  ;;  %v785_v20 = vunpack.c.l.b16 %v737_v8  ;;  %1458 = vmatpush3.bf16.msra.mxu0 %v1770_v12  ;;  %v741_v21 = vpack.c.bf16 %v2863_v56, %v2863_v56  ;;  %v780_v41 = vunpack.c.l.b16 %v732_v16  ;;  %v1777_v60 = vld [vmem:[%s2808_s3] sm:$0xff] (!%p1399_p4)   ;;  %v1780_v7 = vld [vmem:[%s2808_s3 + $0x18] sm:$0xff] (!%p1399_p4)   ;;  %v1782_v9 = vld [vmem:[%s2808_s3 + $0x28] sm:$0xff] (!%p1399_p4)  }
 0x141   : > { %1459 = vmatprep.subr.bf16.mxu0 %v2123_v58  ;;  %v788_v29 = vunpack.c.l.b16 %v740_v42  ;;  %v798_v30 = vsel %vm797_vm4, %v779_v24, %v796_v27  ;;  %v734_v33 = vpack.c.bf16 %v2855_v53, %v2855_v53  ;;  %v742_v13 = vpack.c.bf16 %v2862_v52, %v2862_v52  ;;  %v1781_v8 = vld [vmem:[%s2808_s3 + $0x20] sm:$0xff] (!%p1399_p4)   ;;  %v1783_v12 = vld [vmem:[%s2808_s3 + $0x30] sm:$0xff] (!%p1399_p4)   ;;  %v1786_v45 = vld [vmem:[%s2810_s5 + $0x8] sm:$0xff] (!%p1399_p4)  }
 0x142   : > { %v805_v4 = vsel %vm791_vm1, %v784_v18, %v783_v17  ;;  %v781_v54 = vunpack.c.l.b16 %v733_v19  ;;  %v789_v34 = vunpack.c.l.b16 %v741_v21  ;;  %v800_v35 = vsel %vm799_vm5, %v780_v41, %v798_v30  ;;  %v1785_v10 = vld [vmem:[%s2810_s5] sm:$0xff] (!%p1399_p4)   ;;  %v1787_v17 = vld [vmem:[%s2810_s5 + $0x10] sm:$0xff] (!%p1399_p4)   ;;  %v1788_v18 = vld [vmem:[%s2810_s5 + $0x18] sm:$0xff] (!%p1399_p4)  }
 0x143   : > { %v806_v15 = vsel %vm793_vm2, %v785_v20, %v805_v4  ;;  %vm801_vm6 = vcmask 1046534   ;;  %v782_v37 = vunpack.c.l.b16 %v734_v33  ;;  %v790_v38 = vunpack.c.l.b16 %v742_v13  ;;  %v1789_v44 = vld [vmem:[%s2810_s5 + $0x20] sm:$0xff] (!%p1399_p4)   ;;  %v1790_v20 = vld [vmem:[%s2810_s5 + $0x28] sm:$0xff] (!%p1399_p4)   ;;  %v1791_v16 = vld [vmem:[%s2810_s5 + $0x30] sm:$0xff] (!%p1399_p4)  }
 0x144   : > { %1460 = vmatpush3.bf16.msra.mxu0 %v1771_v61  ;;  %v807_v28 = vsel %vm795_vm3, %v786_v3, %v806_v15  ;;  %v802_v39 = vsel %vm801_vm6, %v781_v54, %v800_v35  ;;  %vm803_vm7 = vcmask 1047559   ;;  %v2126_v59 = vmov (!%p1399_p4), 0.0   ;;  %v1792_v42 = vld [vmem:[%s2810_s5 + $0x38] sm:$0xff] (!%p1399_p4)   ;;  %v1400_v24 = vld [vmem:[#allocation7] ss:$0 sm:$0xff] (!%p1399_p4) }
 0x145   : > { %1461 = vmatprep.subr.bf16.mxu0 %v2123_v58  ;;  %v808_v31 = vsel %vm797_vm4, %v787_v25, %v807_v28  ;;  %v804_v40 = vsel %vm803_vm7, %v782_v37, %v802_v39  ;;  %1493 = vmatprep.subr.bf16.mxu1 (!%p1399_p4), %v2126_v59  ;;  %vm2127_vm8 = vmmov (!%p1399_p4), 0  }
 0x146   : > { %v809_v36 = vsel %vm799_vm5, %v788_v29, %v808_v31  ;;  %1509 = vmatprep.mubr.msk.bf16.mxu1 (!%p1399_p4), %vm2127_vm8, %v2126_v59  ;;  %1494 = vmatpush3.bf16.msra.mxu1 (!%p1399_p4), %v1785_v10  ;;  %v1409_v31 = vld [vmem:[%s2811_s6] ss:$0 sm:$0xff] (!%p1399_p4) }
 0x147   : > { %v810_v53 = vsel %vm801_vm6, %v789_v34, %v809_v36  ;;  %1495 = vmatprep.subr.bf16.mxu1 (!%p1399_p4), %v2126_v59 }
 0x148   : > { %1462 = vmatpush3.bf16.msra.mxu0 %v1772_v26  ;;  %v811_v43 = vsel %vm803_vm7, %v790_v38, %v810_v53 }
 0x149   : > { %1463 = vmatprep.subr.bf16.mxu0 %v2123_v58  ;;  %v812_v46 = vpack.c.b16 %v811_v43, %v804_v40 }
 0x14a   : > { %1496 = vmatpush3.bf16.msra.mxu1 (!%p1399_p4), %v1786_v45 }
 0x14b   : > { %1497 = vmatprep.subr.bf16.mxu1 (!%p1399_p4), %v2126_v59 }
 0x14c   : > { %1464 = vmatpush3.bf16.msra.mxu0 %v1773_v32 }
 0x14d   : > { %1465 = vmatprep.subr.bf16.mxu0 %v2123_v58 }
 0x14e   : > { %1498 = vmatpush3.bf16.msra.mxu1 (!%p1399_p4), %v1787_v17 }
 0x14f   : > { %1499 = vmatprep.subr.bf16.mxu1 (!%p1399_p4), %v2126_v59 }
 0x150   : > { %1466 = vmatpush3.bf16.msra.mxu0 %v1774_v14 }
 0x151   : > { %1467 = vmatprep.subr.bf16.mxu0 %v2123_v58  ;;  %v2125_v58 = vmov (!%p1399_p4), 0  }
 0x152   : > { %1776 = vset.pattern.permute.xlu0 (!%p1399_p4), %v2125_v58  ;;  %1500 = vmatpush3.bf16.msra.mxu1 (!%p1399_p4), %v1788_v18 }
 0x153   : > { %917 = vperm.xlu0 (!%p1399_p4), %1776, %v913_v57   ;;  %1501 = vmatprep.subr.bf16.mxu1 (!%p1399_p4), %v2126_v59 }
 0x154   : > { %1468 = vmatpush3.bf16.msra.mxu0 %v1775_v55 }
 0x155   : > { %1473 = vmatprep.subr.bf16.mxu0 (!%p1399_p4), %v2126_v59 }
 0x156   : > { %1502 = vmatpush3.bf16.msra.mxu1 (!%p1399_p4), %v1789_v44 }
 0x157   : > { %1470 = vmatmul.mubr.bf16.vlgmr.msra.gmra.mrb[0].mxu0 %v812_v46  ;;  %922 = vperm.xlu0 (!%p1399_p4), %1776, %v914_v22  }
 0x158   : > { %1474 = vmatpush3.bf16.msra.mxu0 (!%p1399_p4), %v1777_v60  ;;  %1489 = vmatprep.mubr.msk.bf16.mxu0 (!%p1399_p4), %vm2127_vm8, %v2126_v59 }
 0x159   : > { %1475 = vmatprep.subr.bf16.mxu0 (!%p1399_p4), %v2126_v59  ;;  %1503 = vmatprep.subr.bf16.mxu1 (!%p1399_p4), %v2126_v59 }
 0x15a   : > { %1504 = vmatpush3.bf16.msra.mxu1 (!%p1399_p4), %v1790_v20 }
 0x15b   : > { %1505 = vmatprep.subr.bf16.mxu1 (!%p1399_p4), %v2126_v59 }
 0x15c   : > { %1476 = vmatpush3.bf16.msra.mxu0 (!%p1399_p4), %v1778_v5 }
 0x15d   : > { %1477 = vmatprep.subr.bf16.mxu0 (!%p1399_p4), %v2126_v59 }
 0x15e   : > { %1506 = vmatpush3.bf16.msra.mxu1 (!%p1399_p4), %v1791_v16 }
 0x15f   : > { %1507 = vmatprep.subr.bf16.mxu1 (!%p1399_p4), %v2126_v59 }
 0x160   : > { %1478 = vmatpush3.bf16.msra.mxu0 (!%p1399_p4), %v1779_v6 }
 0x161   : > { %1479 = vmatprep.subr.bf16.mxu0 (!%p1399_p4), %v2126_v59 }
 0x162   : > { %1508 = vmatpush3.bf16.msra.mxu1 (!%p1399_p4), %v1792_v42 }
 0x164   : > { %1480 = vmatpush3.bf16.msra.mxu0 (!%p1399_p4), %v1780_v7 }
 0x165   : > { %1481 = vmatprep.subr.bf16.mxu0 (!%p1399_p4), %v2126_v59 }
 0x168   : > { %1482 = vmatpush3.bf16.msra.mxu0 (!%p1399_p4), %v1781_v8 }
 0x169   : > { %1483 = vmatprep.subr.bf16.mxu0 (!%p1399_p4), %v2126_v59 }
 0x16c   : > { %1484 = vmatpush3.bf16.msra.mxu0 (!%p1399_p4), %v1782_v9 }
 0x16d   : > { %1485 = vmatprep.subr.bf16.mxu0 (!%p1399_p4), %v2126_v59 }
 0x170   : > { %1486 = vmatpush3.bf16.msra.mxu0 (!%p1399_p4), %v1783_v12 }
 0x171   : > { %1487 = vmatprep.subr.bf16.mxu0 (!%p1399_p4), %v2126_v59 }
 0x174   : > { %1488 = vmatpush3.bf16.msra.mxu0 (!%p1399_p4), %v1784_v62 }
 0x1d2   : > { %v918_v63 = vpop.permute.xlu0 (!%p1399_p4), %917 }
 0x1d3   : > { %1793 = vrcp.f32 (!%p1399_p4), %v918_v63 }
 0x1d6   : > { %v923_v0 = vpop.permute.xlu0 (!%p1399_p4), %922 }
 0x1d7   : > { %1795 = vrcp.f32 (!%p1399_p4), %v923_v0 }
 0x1dd   : > { %v1794_v1 = vpop.eup (!%p1399_p4), %1793 }
 0x1e1   : > { %v1796_v3 = vpop.eup (!%p1399_p4), %1795 }
 0x229   : > { %910 = sbr.rel (%p1399_p4) target bundleno = 1010 (0x3f2), region = 109 }
 0x22a   : > { %v896_v48 = vpop.f32.mrb[0].mxu0 }
 0x22b   : > { %v903_v50 = vadd.f32 %v896_v48, %v725_v47  ;;  %v1471_v51 = vpop.f32.mrb[1].mxu0 }
 0x22c   : > { %v899_v11 = vpop.f32.mrb[2].mxu0 }
 0x22d   : > { %905 = vst [vmem:[#allocation2] sm:$0xff] %v903_v50  ;;  %v904_v52 = vadd.f32 %v899_v11, %v726_v49  ;;  %v1472_v56 = vpop.f32.mrb[3].mxu0 }
 0x22f   : > { %906 = vst [vmem:[#allocation2 + $0x8] sm:$0xff] %v904_v52 }
 0x234   : > { %v911_v61 = vld [vmem:[#allocation2] sm:$0xff] }
 0x235   : > { %v926_v4 = vmul.f32 %v1794_v1, %v911_v61 }
 0x236   : > { %v912_v2 = vld [vmem:[#allocation2 + $0x8] sm:$0xff] }
 0x237   : > { %v928_v23 = vmul.f32 %v1796_v3, %v912_v2 }
 0x239   : > { %v929_v15 = vpack.c.bf16 %v928_v23, %v926_v4 }
 0x23b   : > { %1490 = vmatmul.mubr.bf16.vlgmr.msra.gmra.mrb[0].mxu0 %v929_v15 }
 0x30e   : > { %v1035_v25 = vpop.f32.mrb[0].mxu0 }
 0x30f   : > { %v1036_v26 = vadd.f32 %v1400_v24, %v1035_v25  ;;  %v1491_v27 = vpop.f32.mrb[1].mxu0 }
 0x310   : > { %v1038_v28 = vpop.f32.mrb[2].mxu0 }
 0x311   : > { %v1039_v19 = vadd.f32 %v1400_v24, %v1038_v28  ;;  %v1492_v21 = vpop.f32.mrb[3].mxu0  ;;  %v1042_v41 = vmax.f32 %v1036_v26, 0.0 }
 0x313   : > { %v1043_v29 = vmax.f32 %v1039_v19, 0.0 }
 0x315   : > { %v1044_v30 = vpack.c.bf16 %v1043_v29, %v1042_v41 }
 0x317   : > { %1510 = vmatmul.mubr.bf16.vlgmr.msra.gmra.mrb[0].mxu1 %v1044_v30 }
 0x3ea   : > { %v1150_v32 = vpop.f32.mrb[0].mxu1 }
 0x3eb   : > { %v1151_v33 = vadd.f32 %v1409_v31, %v1150_v32  ;;  %v1511_v13 = vpop.f32.mrb[1].mxu1 }
 0x3ec   : > { %v1153_v54 = vpop.f32.mrb[2].mxu1 }
 0x3ed   : > { %v1157_v34 = vmax.f32 %v1151_v33, 0.0  ;;  %v1154_v35 = vadd.f32 %v1409_v31, %v1153_v54  ;;  %v1512_v36 = vpop.f32.mrb[3].mxu1 }
 0x3ef   : > { %1159 = vst [vmem:[%s2385_s19] sm:$0xff] %v1157_v34  ;;  %v1158_v14 = vmax.f32 %v1154_v35, 0.0 }
 0x3f1   : > { %1160 = vst [vmem:[%s2385_s19 + $0x8] sm:$0xff] %v1158_v14 }
 0x3f2 PF: > { %s2881_s22 = sld [smem:[#allocation18_spill]]  ;;  %s1425_s12 = sshll.u32 %s2035_s8, 8 }
 0x3f3   : > { %s2882_s16 = sld [smem:[#allocation21_spill]]  ;;  %s1175_s23 = sshll.u32 %s2385_s19, 4  ;;  %s2742_s23 = int_to_ptr.vmem [resolvable:$true] %s1175_s23 }
 0x3f4   : > { %s1162_s14 = scalar_lea.sflag [#allocation6], %s2362_s21  ;;  %s1853_s25 = scalar_lea.vmem %s2742_s23, 256 }
 0x3f5   : > { %p1854_p5 = scmp.ne.s32.totalorder %s2742_s23, %s1853_s25  ;;  %s2128_s7 = smov [#allocation9]  }
 0x3f6   : > { %s1857_s17 = sshll.u32 %s2128_s7, 4  ;;  %s1858_s17 = int_to_ptr.vmem [resolvable:$false] %s1857_s17 }
 0x3f7   : > { %s1859_s8 = scalar_lea.vmem %s1858_s17, 512  ;;  %p1860_p3 = scmp.lt.s32.totalorder %s2742_s23, %s1858_s17 }
 0x3f8   : > { %p2883_p1 = scmp.ne.s32.totalorder %s2881_s22, 0  ;;  %p1861_p10 = scmp.lt.s32.totalorder %s1859_s8, %s1853_s25 }
 0x3f9   : > { %s2739_s18 = scalar_lea.hbm %s2882_s16, %s1425_s12 }
 0x3fa   : > { %p1855_p11 = pnand %p1854_p5, %p2883_p1  ;;  %p1862_p13 = por %p1861_p10, %p1860_p3 }
 0x3fc   : > { %p1856_p2 = pneg %p1855_p11 }
 0x3fe   : > { %p1863_p12 = pnand %p1862_p13, %p1856_p2 }
 0x400   : > { %1866 = shalt.err (!%p1863_p12)
}
 0x401   : > { %s1867_s19 = scalar_lea.hbm %s2739_s18, 256  ;;  %s1871_s15 = scalar_lea.hbm %s2882_s16, 512 }
 0x402   : > { %p1868_p6 = scmp.ne.s32.totalorder %s2739_s18, %s1867_s19  ;;  %p1872_p9 = scmp.lt.u32.totalorder %s2739_s18, %s2882_s16 }
 0x403   : > { %p1873_p0 = scmp.lt.u32.totalorder %s1871_s15, %s1867_s19  ;;  %p1875_p5 = scmp.lt.u32.totalorder %s1867_s19, %s2739_s18 }
 0x404   : > { %p1869_p7 = pnand %p1868_p6, %p2883_p1 }
 0x405   : > { %p1874_p4 = por %p1873_p0, %p1872_p9 }
 0x406   : > { %p1870_p8 = pneg %p1869_p7 }
 0x407   : > { %p1876_p11 = por %p1875_p5, %p1874_p4 }
 0x409   : > { %p1877_p2 = pnand %p1876_p11, %p1870_p8 }
 0x40b   : > { %1880 = shalt.err (!%p1877_p2)
}
 0x40c   : > { %s2129_s20 = smov 128   ;;  %s2130_s13 = smov 8  }
 0x40d   : > { %1519 = dma.vmem_to_hbm [thread:$0]  (%p2883_p1), %s2742_s23, 256, %s2739_s18, %s1162_s14, %s2129_s20, %s2129_s20, %s2130_s13  }
 0x40e PF: > { %s2884_s25 = sld [smem:[#allocation13_spill]]  ;;  %s2885_s7 = sld [smem:[#allocation19_spill]] }
 0x40f   : > { %p1531_p3 = scmp.ge.s32.totalorder %s2047_s11, 2 }
 0x414   : > { %s1190_s17 = sand.u32 1, %s2884_s25   ;;  %p2886_p10 = scmp.ne.s32.totalorder %s2885_s7, 0 }
 0x415   : > { %s1191_s8 = scalar_lea.sflag [#allocation6], %s1190_s17 }
 0x416   : > { %p1526_p13 = pnand %p1531_p3, %p2886_p10 }
 0x418   : > { %2002 = dma.done.wait (!%p1526_p13), %s1191_s8, 256  }
 0x419   : > { %2004 = vsyncadd (!%p1526_p13), %s1191_s8, 4294967040  ;;  %s24_s11 = sadd.s32 1, %s2047_s11   ;;  %s2887_s22 = sld [smem:[#allocation16_spill]] }
 0x41a   : > { %p21_p12 = scmp.ge.s32.totalorder %s24_s11, 8   ;;  %s2888_s21 = sld [smem:[#allocation17_spill]] }
 0x41b   : > { %s2889_s18 = sld [smem:[#allocation14_spill]]  ;;  %s2890_s23 = sld [smem:[#allocation15_spill]] }
 0x41c   : > { %s2891_s24 = smov %s2023_s28  ;;  %s2892_s25 = smov %s2015_s26 }
 0x41d   : > { %s2893_s26 = smov %s2019_s27  ;;  %s2895_s28 = smov %s2027_s29 }
 0x41e   : > { %s2897_s30 = smov %s2039_s9  ;;  %s2898_s8 = smov %s2043_s10 }
 0x41f   : > { %s2894_s27 = smov %s2887_s22  ;;  %23 = sbr.rel (!%p21_p12) target bundleno = 13 (0xd), region = 173 }
 0x420   : > { %s2896_s29 = smov %s2888_s21 }
 0x421   : > { %s2899_s9 = smov %s2889_s18  ;;  %s2900_s10 = smov %s2890_s23 }
 0x426   :  { %1196 = vsyncpa [#allocation5], 1 }
 0x427   :  { %1198 = vsyncpa [#allocation5 + $0x1], 1 }
 0x428   :  { %1199 = vsyncpa [#allocation8], 1 }
 0x429   :  { %1200 = vsyncpa [#allocation6], 1 }
 0x42a   :  { %1202 = vsyncpa [#allocation6 + $0x1], 1 }

</bundles_post_ra>
